<compile_context>
chip_gen: v5e
topology: v5e:2x2
jax: 0.10.0
libtpu: 0.0.40
codegen_flags: <defaults>
</compile_context>

<pallas_src>
import math

import jax
import jax.numpy as jnp
from jax.experimental import pallas as pl
from jax.experimental.pallas import tpu as pltpu

C50_MAX = 60.0
C50_MIN = -10.0
SNR_MAX = 80.0
SNR_MIN = -15.0


# ----------------------------- activations --------------------------------- #
def _act_vad(x):
    return jax.nn.sigmoid(x.astype(jnp.float32))


def _act_snr(x):
    # ParametricSigmoid(alpha=SNR_MAX, beta=SNR_MIN): (beta - alpha)*sigmoid + alpha
    return (SNR_MIN - SNR_MAX) * jax.nn.sigmoid(x.astype(jnp.float32)) + SNR_MAX


def _act_c50(x):
    # ParametricSigmoid(alpha=C50_MAX, beta=C50_MIN): (beta - alpha)*sigmoid + alpha
    return (C50_MIN - C50_MAX) * jax.nn.sigmoid(x.astype(jnp.float32)) + C50_MAX


# ------------------------------- kernels ------------------------------------ #
def _fused_aligned_kernel(vad_ref, snr_ref, c50_ref, out_ref):
    """O % 128 == 0: write the mode-major '(n o)' layout via lane-aligned
    static slices of the output block (unmasked, lane-dense stores)."""
    o = vad_ref.shape[-1]
    dt = out_ref.dtype
    out_ref[:, 0:o] = _act_vad(vad_ref[...]).astype(dt)
    out_ref[:, o:2 * o] = _act_snr(snr_ref[...]).astype(dt)
    out_ref[:, 2 * o:3 * o] = _act_c50(c50_ref[...]).astype(dt)


def _per_mode_kernel(vad_ref, snr_ref, c50_ref, vad_out, snr_out, c50_out):
    """Fallback for small O: lane-dense per-mode elementwise slabs; the
    '(n o)' interleave is then one wrapper-side stack (extra HBM pass)."""
    vad_out[...] = _act_vad(vad_ref[...]).astype(vad_out.dtype)
    snr_out[...] = _act_snr(snr_ref[...]).astype(snr_out.dtype)
    c50_out[...] = _act_c50(c50_ref[...]).astype(c50_out.dtype)


def _make_grouped_fused_call(rg, w, tq, g, o, dtype):
    """Grouped small-O path with the '(n o)' interleave fused in-kernel.

    Inputs are (rg, w = g*o) lane-dense slabs (w is a multiple of 128); the
    output block is (tq, 3*w) holding, for each original row j of the group,
    [vad_j | snr_j | c50_j].  The interleave is a lane shuffle that rides on
    the otherwise-idle XLU slots (only EUP/VPU/ld-st are used by the math)."""

    def kernel(vad_ref, snr_ref, c50_ref, out_ref):
        rows = vad_ref.shape[0]
        v = _act_vad(vad_ref[...]).reshape(rows, g, o)
        s = _act_snr(snr_ref[...]).reshape(rows, g, o)
        c = _act_c50(c50_ref[...]).reshape(rows, g, o)
        out = jnp.stack((v, s, c), axis=2).reshape(rows, 3 * g * o)
        out_ref[...] = out.astype(out_ref.dtype)

    in_spec = pl.BlockSpec((tq, w), lambda i: (i, 0))
    return pl.pallas_call(
        kernel,
        out_shape=jax.ShapeDtypeStruct((rg, 3 * w), dtype),
        grid=(pl.cdiv(rg, tq),),
        in_specs=[in_spec, in_spec, in_spec],
        out_specs=pl.BlockSpec((tq, 3 * w), lambda i: (i, 0)),
        compiler_params=pltpu.CompilerParams(dimension_semantics=("parallel",)),
    )


_GROUPED_FUSED_OK = {}


def _grouped_fused_or_none(rg, w, tq, g, o, dtype):
    """Compile-probe the fused-interleave variant once per shape signature.
    Returns the callable if Mosaic lowers it, else None (caller falls back)."""
    key = (rg, w, tq, g, o, jnp.dtype(dtype).name)
    ok = _GROUPED_FUSED_OK.get(key)
    if ok is None:
        try:
            fn = _make_grouped_fused_call(rg, w, tq, g, o, dtype)
            sds = jax.ShapeDtypeStruct((rg, w), dtype)
            jax.jit(fn).lower(sds, sds, sds).compile()
            ok = True
        except Exception:
            ok = False
        _GROUPED_FUSED_OK[key] = ok
    return _make_grouped_fused_call(rg, w, tq, g, o, dtype) if ok else None


# ------------------------------ tiling helpers ------------------------------ #
def _default_block_bytes():
    """Per-input-block bytes derived per TPU generation.  Live VMEM is about
    12 block-equivalents (3 inputs + an output worth 3 inputs, double
    buffered), so keep 12*blk inside the scoped-VMEM default: v5-class 16 MiB,
    v6e/v7x 32 MiB (v7x physical VMEM is only 64 MiB per TensorCore)."""
    try:
        kind = jax.devices()[0].device_kind.lower()
    except Exception:
        kind = ""
    scoped = (14 << 20) if "v5" in kind else (28 << 20)
    return max(256 * 1024, min(2 << 20, scoped // 12))


def _row_tile(num_rows, width, itemsize, blk_bytes):
    """Rows per block so one input block is ~blk_bytes; multiple of 16
    sublanes (valid for both f32 and bf16 packing) or the full row extent."""
    rows = max(1, int(blk_bytes) // max(1, width * itemsize))
    if rows >= num_rows:
        return num_rows
    rows = max(16, (rows // 16) * 16)
    return min(rows, num_rows)


# -------------------------------- wrapper ----------------------------------- #
def custom_activation(x_vad, x_snr, x_c50, *, block_bytes=None,
                      min_pallas_elems=128 * 1024):
    """CustomActivation forward. Returns (B, T, 3*O) with last axis
    [sigmoid(vad) | param_sigmoid(snr) | param_sigmoid(c50)] (mode-major)."""
    B, T, O = x_vad.shape
    assert x_snr.shape == (B, T, O) and x_c50.shape == (B, T, O)
    dtype = x_vad.dtype
    R = B * T

    # Tiny inputs: Pallas launch / per-step overhead dwarfs the work; XLA's
    # elementwise fusion is already at the HBM roofline there.
    # TODO(synk): best case is fusing this activation as the epilogue of the
    # upstream kernel that produces the vad/snr/c50 logits.
    if R * O < min_pallas_elems:
        return custom_activation_reference(x_vad, x_snr, x_c50)

    if block_bytes is None:
        block_bytes = _default_block_bytes()
    itemsize = jnp.dtype(dtype).itemsize
    params = pltpu.CompilerParams(dimension_semantics=("parallel",))

    if O % 128 == 0:
        # ---- lane-aligned fused path: mode boundaries on vreg boundaries ----
        xs = [x.reshape(R, O) for x in (x_vad, x_snr, x_c50)]
        tr = _row_tile(R, O, itemsize, block_bytes)
        in_spec = pl.BlockSpec((tr, O), lambda i: (i, 0))
        out = pl.pallas_call(
            _fused_aligned_kernel,
            out_shape=jax.ShapeDtypeStruct((R, 3 * O), dtype),
            grid=(pl.cdiv(R, tr),),
            in_specs=[in_spec, in_spec, in_spec],
            out_specs=pl.BlockSpec((tr, 3 * O), lambda i: (i, 0)),
            compiler_params=params,
        )(*xs)
        return out.reshape(B, T, 3 * O)

    # ---- grouped lane-dense path (typical brouhaha case: tiny O) ----
    # G consecutive rows are grouped so each mode slab has lane width
    # w = G*O = lcm(O, 128): an exact multiple of 128 -> unmasked stores.
    g = 128 // math.gcd(O, 128)
    w = g * O
    Rp = ((R + g - 1) // g) * g
    xs = [x.reshape(R, O) for x in (x_vad, x_snr, x_c50)]
    if Rp != R:
        # Pad (< G <= 128) rows so the grouping reshape stays contiguous; the
        # pad rows are computed on garbage zeros and sliced off below.
        xs = [jnp.pad(x, ((0, Rp - R), (0, 0))) for x in xs]
    rg = Rp // g
    xs = [x.reshape(rg, w) for x in xs]
    tq = _row_tile(rg, w, itemsize, block_bytes)

    fused = _grouped_fused_or_none(rg, w, tq, g, O, dtype)
    if fused is not None:
        # Single output, '(n o)' interleave done in-kernel: no extra HBM pass.
        out = fused(*xs).reshape(Rp, 3 * O)
    else:
        # Fallback: per-mode outputs + one XLA stack (extra HBM pass), used
        # only if Mosaic rejects the in-kernel lane shuffle for this (G, O).
        spec = pl.BlockSpec((tq, w), lambda i: (i, 0))
        sds = jax.ShapeDtypeStruct((rg, w), dtype)
        vad, snr, c50 = pl.pallas_call(
            _per_mode_kernel,
            out_shape=(sds, sds, sds),
            grid=(pl.cdiv(rg, tq),),
            in_specs=[spec, spec, spec],
            out_specs=(spec, spec, spec),
            compiler_params=params,
        )(*xs)
        out = jnp.stack((vad.reshape(Rp, O), snr.reshape(Rp, O),
                         c50.reshape(Rp, O)), axis=1).reshape(Rp, 3 * O)

    if Rp != R:
        out = out[:R]
    return out.reshape(B, T, 3 * O)


# ------------------------------- reference ---------------------------------- #
def custom_activation_reference(x_vad, x_snr, x_c50):
    f32 = jnp.float32
    vad = jax.nn.sigmoid(x_vad.astype(f32))
    snr = (SNR_MIN - SNR_MAX) * jax.nn.sigmoid(x_snr.astype(f32)) + SNR_MAX
    c50 = (C50_MIN - C50_MAX) * jax.nn.sigmoid(x_c50.astype(f32)) + C50_MAX
    return jnp.concatenate([vad, snr, c50], axis=-1).astype(x_vad.dtype)


# --------------------------------- demo -------------------------------------- #
if __name__ == "__main__":
    key = jax.random.PRNGKey(0)

    def _inputs(k, b, t, o, dtype):
        kv, ks, kc = jax.random.split(k, 3)
        mk = lambda kk: jax.random.normal(kk, (b, t, o), dtype=jnp.float32).astype(dtype)
        return mk(kv), mk(ks), mk(kc)

    # (name, B, T, O, dtype, block_bytes, min_pallas_elems, atol)
    # Small block_bytes / min_pallas_elems=0 force the Pallas paths at small
    # demo shapes (production defaults are larger).
    cases = [
        ("grouped_small_O_f32", 2, 512, 4, jnp.float32, 8 * 1024, 0, 1e-4),       # grouped, 2-step grid
        ("fused_aligned_O128_f32", 2, 64, 128, jnp.float32, 8 * 1024, 0, 1e-4),   # O % 128 == 0 path
        ("grouped_small_O_bf16", 2, 512, 4, jnp.bfloat16, 8 * 1024, 0, 0.5),      # bf16 I/O, f32 math
        ("grouped_O1_padded_f32", 1, 100, 1, jnp.float32, 8 * 1024, 0, 1e-4),     # O=1 head, padded R
        ("tiny_fallback_f32", 2, 8, 4, jnp.float32, None, 128 * 1024, 1e-4),      # pure-JAX fallback
    ]

    for name, b, t, o, dtype, blk, min_elems, atol in cases:
        key, sub = jax.random.split(key)
        xv, xs, xc = _inputs(sub, b, t, o, dtype)
        out = custom_activation(xv, xs, xc, block_bytes=blk,
                                min_pallas_elems=min_elems)
        out = jax.block_until_ready(out)
        ref = custom_activation_reference(xv, xs, xc)
        assert out.shape == (b, t, 3 * o), (name, out.shape)
        assert out.dtype == dtype, (name, out.dtype)
        err = float(jnp.max(jnp.abs(out.astype(jnp.float32) - ref.astype(jnp.float32))))
        assert err <= atol, (name, err)

    print("KERNEL_OK")
</pallas_src>

<mosaic_0001>
module attributes {stable_mosaic.version = 11 : i64} {
  func.func @_per_mode_kernel(%arg0: i32, %arg1: memref<16x128xf32, #tpu.memory_space<vmem>>, %arg2: memref<16x128xf32, #tpu.memory_space<vmem>>, %arg3: memref<16x128xf32, #tpu.memory_space<vmem>>, %arg4: memref<16x128xf32, #tpu.memory_space<vmem>>, %arg5: memref<16x128xf32, #tpu.memory_space<vmem>>, %arg6: memref<16x128xf32, #tpu.memory_space<vmem>>) attributes {dimension_semantics = [#tpu.dimension_semantics<parallel>], iteration_bounds = array<i64: 2>, scalar_prefetch = 0 : i64, scratch_operands = 0 : i64, tpu.core_type = #tpu.core_type<tc>, window_params = [{transform_indices = @transform_0, window_bounds = array<i64: 16, 128>}, {transform_indices = @transform_1, window_bounds = array<i64: 16, 128>}, {transform_indices = @transform_2, window_bounds = array<i64: 16, 128>}, {transform_indices = @transform_3, window_bounds = array<i64: 16, 128>}, {transform_indices = @transform_4, window_bounds = array<i64: 16, 128>}, {transform_indices = @transform_5, window_bounds = array<i64: 16, 128>}]} {
    %c0 = arith.constant 0 : index
    %c0_0 = arith.constant 0 : index
    %0 = vector.load %arg1[%c0, %c0_0] : memref<16x128xf32, #tpu.memory_space<vmem>>, vector<16x128xf32>
    %1 = arith.negf %0 : vector<16x128xf32>
    %2 = math.exp %1 : vector<16x128xf32>
    %cst = arith.constant 1.000000e+00 : f32
    %3 = vector.broadcast %cst : f32 to vector<16x128xf32>
    %4 = arith.addf %3, %2 : vector<16x128xf32>
    %5 = arith.divf %3, %4 : vector<16x128xf32>
    %c0_1 = arith.constant 0 : index
    %c0_2 = arith.constant 0 : index
    %6 = vector.load %arg4[%c0_1, %c0_2] : memref<16x128xf32, #tpu.memory_space<vmem>>, vector<16x128xf32>
    tpu.vector_store %arg4[%c0_1, %c0_2], %5 {strides = array<i32>} : memref<16x128xf32, #tpu.memory_space<vmem>>, vector<16x128xf32>,
    %c0_3 = arith.constant 0 : index
    %c0_4 = arith.constant 0 : index
    %7 = vector.load %arg2[%c0_3, %c0_4] : memref<16x128xf32, #tpu.memory_space<vmem>>, vector<16x128xf32>
    %8 = arith.negf %7 : vector<16x128xf32>
    %9 = math.exp %8 : vector<16x128xf32>
    %cst_5 = arith.constant 1.000000e+00 : f32
    %10 = vector.broadcast %cst_5 : f32 to vector<16x128xf32>
    %11 = arith.addf %10, %9 : vector<16x128xf32>
    %12 = arith.divf %10, %11 : vector<16x128xf32>
    %cst_6 = arith.constant -9.500000e+01 : f32
    %13 = vector.broadcast %cst_6 : f32 to vector<16x128xf32>
    %14 = arith.mulf %13, %12 : vector<16x128xf32>
    %cst_7 = arith.constant 8.000000e+01 : f32
    %15 = vector.broadcast %cst_7 : f32 to vector<16x128xf32>
    %16 = arith.addf %14, %15 : vector<16x128xf32>
    %c0_8 = arith.constant 0 : index
    %c0_9 = arith.constant 0 : index
    %17 = vector.load %arg5[%c0_8, %c0_9] : memref<16x128xf32, #tpu.memory_space<vmem>>, vector<16x128xf32>
    tpu.vector_store %arg5[%c0_8, %c0_9], %16 {strides = array<i32>} : memref<16x128xf32, #tpu.memory_space<vmem>>, vector<16x128xf32>,
    %c0_10 = arith.constant 0 : index
    %c0_11 = arith.constant 0 : index
    %18 = vector.load %arg3[%c0_10, %c0_11] : memref<16x128xf32, #tpu.memory_space<vmem>>, vector<16x128xf32>
    %19 = arith.negf %18 : vector<16x128xf32>
    %20 = math.exp %19 : vector<16x128xf32>
    %cst_12 = arith.constant 1.000000e+00 : f32
    %21 = vector.broadcast %cst_12 : f32 to vector<16x128xf32>
    %22 = arith.addf %21, %20 : vector<16x128xf32>
    %23 = arith.divf %21, %22 : vector<16x128xf32>
    %cst_13 = arith.constant -7.000000e+01 : f32
    %24 = vector.broadcast %cst_13 : f32 to vector<16x128xf32>
    %25 = arith.mulf %24, %23 : vector<16x128xf32>
    %cst_14 = arith.constant 6.000000e+01 : f32
    %26 = vector.broadcast %cst_14 : f32 to vector<16x128xf32>
    %27 = arith.addf %25, %26 : vector<16x128xf32>
    %c0_15 = arith.constant 0 : index
    %c0_16 = arith.constant 0 : index
    %28 = vector.load %arg6[%c0_15, %c0_16] : memref<16x128xf32, #tpu.memory_space<vmem>>, vector<16x128xf32>
    tpu.vector_store %arg6[%c0_15, %c0_16], %27 {strides = array<i32>} : memref<16x128xf32, #tpu.memory_space<vmem>>, vector<16x128xf32>,
    return
  }
  func.func @transform_0(%arg0: i32) -> (i32, i32) {
    %c0_i32 = arith.constant 0 : i32
    %c0_i32_0 = arith.constant 0 : i32
    return %arg0, %c0_i32 : i32, i32
  }
  func.func @transform_1(%arg0: i32) -> (i32, i32) {
    %c0_i32 = arith.constant 0 : i32
    %c0_i32_0 = arith.constant 0 : i32
    return %arg0, %c0_i32 : i32, i32
  }
  func.func @transform_2(%arg0: i32) -> (i32, i32) {
    %c0_i32 = arith.constant 0 : i32
    %c0_i32_0 = arith.constant 0 : i32
    return %arg0, %c0_i32 : i32, i32
  }
  func.func @transform_3(%arg0: i32) -> (i32, i32) {
    %c0_i32 = arith.constant 0 : i32
    %c0_i32_0 = arith.constant 0 : i32
    return %arg0, %c0_i32 : i32, i32
  }
  func.func @transform_4(%arg0: i32) -> (i32, i32) {
    %c0_i32 = arith.constant 0 : i32
    %c0_i32_0 = arith.constant 0 : i32
    return %arg0, %c0_i32 : i32, i32
  }
  func.func @transform_5(%arg0: i32) -> (i32, i32) {
    %c0_i32 = arith.constant 0 : i32
    %c0_i32_0 = arith.constant 0 : i32
    return %arg0, %c0_i32 : i32, i32
  }
}

</mosaic_0001>

<bundles_post_ra>
// kernel: tpu_custom_call.1
= control target key start
LH: loop header
LB: loop body
LE: loop exit
PB: predicated region body
PF: predicated region fallthrough
CT: control target
= control target key end

     0   :  { %s1518_s0 = inlined_call_operand.hbm [shape: f32[32,128], index: 0, kind: input, shape index: {}]   ;;  %s1519_s1 = inlined_call_operand.hbm [shape: f32[32,128], index: 1, kind: input, shape index: {}]   ;;  %s1520_s2 = inlined_call_operand.hbm [shape: f32[32,128], index: 2, kind: input, shape index: {}]   ;;  %s1521_s3 = inlined_call_operand.hbm [shape: f32[32,128], index: 3, kind: output, shape index: {0}]   ;;  %s1522_s4 = inlined_call_operand.hbm [shape: f32[32,128], index: 4, kind: output, shape index: {1}]   ;;  %s1523_s5 = inlined_call_operand.hbm [shape: f32[32,128], index: 5, kind: output, shape index: {2}]  }
   0x1   :  { %1531 = sst [smem:[#allocation19_spill]] %s1518_s0 }
   0x2   :  { %1532 = sst [smem:[#allocation20_spill]] %s1519_s1 }
   0x3   :  { %11 = vsyncpa [#allocation3], 0 }
   0x4   :  { %13 = vsyncpa [#allocation3 + $0x1], 0 }
   0x5   :  { %14 = vsyncpa [#allocation6], 0 }
   0x6   :  { %16 = vsyncpa [#allocation6 + $0x1], 0 }
   0x7   :  { %17 = vsyncpa [#allocation4], 0 }
   0x8   :  { %19 = vsyncpa [#allocation4 + $0x1], 0 }
   0x9   :  { %20 = vsyncpa [#allocation10], 0 }
   0xa   :  { %22 = vsyncpa [#allocation10 + $0x1], 0  ;;  %s1115_s18 = smov 0   ;;  %s1117_s19 = smov 0  }
   0xb   :  { %s1119_s20 = smov 0   ;;  %s1121_s21 = smov 0  }
   0xc LB: > { %1533 = sst [smem:[#allocation16_spill]] %s1075_s20  ;;  %s1136_s22 = sadd.s32 4294967295, %s1079_s21   ;;  %s1079_s21 = sphi %s1121_s21, %s1566_s21   ;;  %s1075_s20 = sphi %s1119_s20, %s1568_s20   ;;  %s1071_s19 = sphi %s1117_s19, %s1570_s19   ;;  %s1067_s18 = sphi %s1115_s18, %s1569_s18  }
   0xd   : > { %s1524_s23 = sadd.s32 4294967294, %s1079_s21   ;;  %s1140_s24 = sadd.s32 1, %s1079_s21  }
   0xe   : > { %1534 = sst [smem:[#allocation17_spill]] %s1140_s24  ;;  %s35_s25 = sadd.s32 1, %s1075_s20 }
   0xf   : > { %s32_s26 = ssub.s32 %s1079_s21, %s1140_s24  ;;  %p42_p0 = scmp.ne.s32.totalorder %s1075_s20, %s1071_s19 }
  0x10   : > { %p33_p1 = scmp.eq.s32.totalorder %s32_s26, 0  ;;  %p43_p2 = scmp.eq.s32.totalorder %s1079_s21, 0 }
  0x11   : > { %p48_p3 = scmp.ne.s32.totalorder %s1071_s19, %s1067_s18  ;;  %p49_p4 = scmp.eq.s32.totalorder %s1136_s22, 0 }
  0x12   : > { %s1152_s27 = scalar_select %p33_p1, %s1075_s20, %s35_s25  }
  0x13   : > { %p44_p5 = por %p43_p2, %p42_p0  ;;  %p1154_p6 = por %p49_p4, %p48_p3 }
  0x14   : > { %1535 = sst [smem:[#allocation18_spill]] %s1152_s27  ;;  %p124_p7 = scmp.eq.s32.totalorder %s1136_s22, 1 }
  0x15   : > { %p130_p8 = scmp.eq.s32.totalorder %s1524_s23, 1  ;;  %p725_p9 = scmp.ge.s32.totalorder %s1079_s21, 2 }
  0x16   : > { %p797_p10 = scmp.lt.s32.totalorder %s1079_s21, 2  ;;  %p1163_p11 = por %p124_p7, %p42_p0 }
  0x17   : > { %p1167_p12 = por %p130_p8, %p48_p3  ;;  %s1525_s6 = sand.u32 1, %s1075_s20  }
  0x18   : > { %s1173_s7 = sshll.u32 %s1079_s21, 4  ;;  %s1177_s8 = sshll.u32 %s1525_s6, 4 }
  0x19   : > { %p1179_p13 = pnand %p797_p10, %p44_p5  ;;  %s224_s10 = sand.u32 1, %s1079_s21  }
  0x1a   : > { %s1540_s1 = sld [smem:[#allocation20_spill]]  ;;  %s228_s14 = scalar_lea.vmem [#allocation5], %s1177_s8 }
  0x1b   : > { %s236_s15 = sshll.u32 %s228_s14, 4  ;;  %p735_p0 = scmp.ge.s32.totalorder %s1079_s21, 1  ;;  %s237_s15 = int_to_ptr.vmem [resolvable:$true] %s236_s15 }
  0x1c   : > { %s1190_s17 = scalar_lea.sflag [#allocation6], %s224_s10  ;;  %p863_p2 = pneg %p1179_p13 }
  0x20   : > { %s233_s13 = scalar_lea.hbm %s1540_s1, %s1173_s7  ;;  %s866_s14 = scalar_lea.hbm %s1540_s1, 32 }
  0x21   : > { %s234_s16 = sshll.u32 %s233_s13, 4  ;;  %s235_s16 = int_to_ptr.hbm [resolvable:$true] %s234_s16 }
  0x22   : > { %s859_s25 = sshra.s32 %s235_s16, 4  ;;  %s860_s25 = int_to_ptr.hbm [resolvable:$true] %s859_s25 }
  0x23   : > { %s861_s26 = scalar_lea.hbm %s860_s25, 16  ;;  %p867_p5 = scmp.lt.s32.totalorder %s860_s25, %s1540_s1 }
  0x24   : > { %p862_p1 = scmp.ne.s32.totalorder %s860_s25, %s861_s26  ;;  %p868_p7 = scmp.lt.s32.totalorder %s866_s14, %s861_s26 }
  0x26   : > { %p864_p3 = pnand %p863_p2, %p862_p1  ;;  %p869_p8 = por %p868_p7, %p867_p5 }
  0x28   : > { %p865_p4 = pneg %p864_p3 }
  0x2a   : > { %p870_p10 = pnand %p869_p8, %p865_p4 }
  0x2c   : > { %873 = shalt.err (!%p870_p10)
}
  0x2d   : > { %s1528_s10 = smov 128   ;;  %s1082_s6 = smov 8  }
  0x2e   : > { %783 = dma.hbm_to_vmem [thread:$0]  (!%p1179_p13), %s235_s16, 256, %s237_s15, %s1190_s17, %s1528_s10, %s1528_s10, %s1082_s6  }
  0x2f   : > { %p266_p1 = scmp.lt.s32.totalorder %s1079_s21, 3  ;;  %s1541_s0 = sld [smem:[#allocation19_spill]] }
  0x30   : > { %s206_s14 = scalar_lea.vmem [#allocation2], %s1177_s8  ;;  %s1543_s1 = sand.u32 1, %s1075_s20  }
  0x31   : > { %p1216_p3 = pnand %p735_p0, %p266_p1  ;;  %s214_s13 = sshll.u32 %s206_s14, 4  ;;  %s215_s13 = int_to_ptr.vmem [resolvable:$true] %s214_s13 }
  0x32   : > { %s203_s27 = scalar_lea.sflag [#allocation3], %s1543_s1 }
  0x35   : > { %s211_s26 = scalar_lea.hbm %s1541_s0, %s1173_s7  ;;  %s896_s25 = scalar_lea.hbm %s1541_s0, 32 }
  0x36   : > { %s212_s12 = sshll.u32 %s211_s26, 4  ;;  %s213_s12 = int_to_ptr.hbm [resolvable:$true] %s212_s12 }
  0x37   : > { %s889_s24 = sshra.s32 %s213_s12, 4  ;;  %s890_s24 = int_to_ptr.hbm [resolvable:$true] %s889_s24 }
  0x38   : > { %s891_s15 = scalar_lea.hbm %s890_s24, 16  ;;  %p897_p0 = scmp.lt.s32.totalorder %s890_s24, %s1541_s0 }
  0x39   : > { %p892_p4 = scmp.ne.s32.totalorder %s890_s24, %s891_s15  ;;  %p898_p8 = scmp.lt.s32.totalorder %s896_s25, %s891_s15 }
  0x3b   : > { %p894_p5 = pnand %p892_p4, %p863_p2  ;;  %p899_p10 = por %p898_p8, %p897_p0 }
  0x3d   : > { %p895_p7 = pneg %p894_p5 }
  0x3f   : > { %p900_p1 = pnand %p899_p10, %p895_p7 }
  0x41   : > { %903 = shalt.err (!%p900_p1)
}
  0x42   : > { %s1544_s1 = smov 128   ;;  %s255_s23 = scalar_lea.hbm %s1520_s2, %s1173_s7 }
  0x43   : > { %780 = dma.hbm_to_vmem [thread:$0]  (!%p1179_p13), %s213_s12, 256, %s215_s13, %s203_s27, %s1544_s1, %s1544_s1, %s1082_s6  }
  0x44   : > { %s250_s20 = scalar_lea.vmem [#allocation7], %s1177_s8  ;;  %s256_s24 = sshll.u32 %s255_s23, 4  ;;  %s257_s24 = int_to_ptr.hbm [resolvable:$true] %s256_s24 }
  0x45   : > { %s258_s10 = sshll.u32 %s250_s20, 4  ;;  %s919_s15 = sshra.s32 %s257_s24, 4  ;;  %s259_s10 = int_to_ptr.vmem [resolvable:$true] %s258_s10  ;;  %s920_s15 = int_to_ptr.hbm [resolvable:$true] %s919_s15 }
  0x46   : > { %s921_s25 = scalar_lea.hbm %s920_s15, 16  ;;  %s926_s27 = scalar_lea.hbm %s1520_s2, 32 }
  0x47   : > { %p922_p4 = scmp.ne.s32.totalorder %s920_s15, %s921_s25  ;;  %p927_p0 = scmp.lt.s32.totalorder %s920_s15, %s1520_s2 }
  0x48   : > { %p928_p8 = scmp.lt.s32.totalorder %s926_s27, %s921_s25 }
  0x49   : > { %p924_p5 = pnand %p922_p4, %p863_p2 }
  0x4a   : > { %p929_p10 = por %p928_p8, %p927_p0 }
  0x4b   : > { %p925_p7 = pneg %p924_p5 }
  0x4d   : > { %p930_p1 = pnand %p929_p10, %p925_p7 }
  0x4f   : > { %933 = shalt.err (!%p930_p1)
}
  0x50   : > { %786 = dma.hbm_to_vmem [thread:$0]  (!%p1179_p13), %s257_s24, 256, %s259_s10, %s1190_s17, %s1544_s1, %s1544_s1, %s1082_s6  }
  0x51   : > { %270 = sbr.rel (%p1216_p3) target bundleno = 154 (0x9a), region = 32  ;;  %s1260_s0 = sand.u32 (!%p1216_p3), 1, %s1071_s19  }
  0x52   : > { %s1263_s20 = sshll.u32 (!%p1216_p3), %s1260_s0, 4  ;;  %s273_s7 = scalar_lea.sflag (!%p1216_p3), [#allocation3], %s1260_s0 }
  0x53   : > { %s276_s8 = scalar_lea.vmem (!%p1216_p3), [#allocation2], %s1263_s20 }
  0x56   : > { %1050 = dma.done.wait (%p1154_p6), %s273_s7, 256  }
  0x57   : > { %1052 = vsyncadd (%p1154_p6), %s273_s7, 4294967040  ;;  %s282_s6 = sand.u32 1, %s1136_s22   ;;  %s286_s17 = scalar_lea.vmem [#allocation5], %s1263_s20 }
  0x58   : > { %s283_s9 = scalar_lea.sflag [#allocation6], %s282_s6 }
  0x59   : > { %1054 = dma.done.wait (%p1154_p6), %s283_s9, 512  }
  0x5a   : > { %1056 = vsyncadd (%p1154_p6), %s283_s9, 4294966784  ;;  %v392_v0 = vld [vmem:[%s286_s17] sm:$0xff]  ;;  %v393_v1 = vld [vmem:[%s286_s17 + $0x8] sm:$0xff]  ;;  %s296_s11 = scalar_lea.vmem [#allocation7], %s1263_s20  ;;  %s1340_s28 = sshll.u32 %s1136_s22, 4 }
  0x5b   : > { %v350_v2 = vld [vmem:[%s276_s8] sm:$0xff]  ;;  %v744_v3 = vmul.f32 -1.442695, %v392_v0  ;;  %v745_v4 = vmul.f32 -1.442695, %v393_v1  ;;  %v351_v6 = vld [vmem:[%s276_s8 + $0x8] sm:$0xff]  ;;  %s523_s15 = scalar_lea.hbm %s1522_s4, %s1340_s28  ;;  %s506_s27 = scalar_lea.hbm %s1521_s3, %s1340_s28 }
  0x5c   : > { %v742_v5 = vmul.f32 -1.442695, %v350_v2  ;;  %v438_v7 = vld [vmem:[%s296_s11] sm:$0xff]  ;;  %v439_v8 = vld [vmem:[%s296_s11 + $0x8] sm:$0xff]  ;;  %v743_v9 = vmul.f32 -1.442695, %v351_v6  ;;  %s540_s9 = scalar_lea.hbm %s1523_s5, %s1340_s28 }
  0x5d   : > { %835 = vpow2.f32 %v744_v3  ;;  %v746_v10 = vmul.f32 -1.442695, %v438_v7  ;;  %v747_v11 = vmul.f32 -1.442695, %v439_v8  ;;  %s1346_s1 = scalar_lea.vmem [#allocation9], %s1263_s20  ;;  %s1350_s16 = scalar_lea.vmem [#allocation8], %s1263_s20 }
  0x5e   : > { %837 = vpow2.f32 %v745_v4  ;;  %s524_s14 = sshll.u32 %s1346_s1, 4  ;;  %s507_s23 = sshll.u32 %s1350_s16, 4  ;;  %s1384_s14 = int_to_ptr.vmem [resolvable:$true] %s524_s14  ;;  %s1386_s23 = int_to_ptr.vmem [resolvable:$true] %s507_s23 }
  0x5f   : > { %839 = vpow2.f32 %v742_v5  ;;  %s1399_s12 = sshll.u32 %s523_s15, 4  ;;  %s1406_s13 = sshll.u32 %s506_s27, 4  ;;  %s527_s12 = int_to_ptr.hbm [resolvable:$true] %s1399_s12  ;;  %s510_s13 = int_to_ptr.hbm [resolvable:$true] %s1406_s13 }
  0x60   : > { %841 = vpow2.f32 %v743_v9  ;;  %s1430_s17 = scalar_lea.vmem [#allocation11], %s1263_s20  ;;  %s1435_s28 = sshll.u32 %s540_s9, 4  ;;  %s544_s28 = int_to_ptr.hbm [resolvable:$true] %s1435_s28 }
  0x61   : > { %843 = vpow2.f32 %v746_v10  ;;  %s541_s11 = sshll.u32 %s1430_s17, 4  ;;  %s963_s10 = sshra.s32 %s527_s12, 4  ;;  %s964_s10 = int_to_ptr.hbm [resolvable:$true] %s963_s10  ;;  %s542_s11 = int_to_ptr.vmem [resolvable:$true] %s541_s11 }
  0x62   : > { %845 = vpow2.f32 %v747_v11  ;;  %s965_s24 = scalar_lea.hbm %s964_s10, 16  ;;  %s969_s15 = scalar_lea.hbm %s1522_s4, 32 }
  0x63   : > { %v836_v12 = vpop.eup %835  ;;  %p966_p6 = scmp.ne.s32.totalorder %s964_s10, %s965_s24  ;;  %p970_p3 = scmp.lt.s32.totalorder %s964_s10, %s1522_s4 }
  0x64   : > { %v838_v13 = vpop.eup %837  ;;  %v400_v14 = vadd.f32 1.0, %v836_v12  ;;  %p971_p4 = scmp.lt.s32.totalorder %s969_s15, %s965_s24 }
  0x65   : > { %v840_v15 = vpop.eup %839  ;;  %v401_v16 = vadd.f32 1.0, %v838_v13  ;;  %p967_p13 = pnand %p966_p6, %p1163_p11 }
  0x66   : > { %v842_v17 = vpop.eup %841  ;;  %847 = vrcp.f32 %v400_v14  ;;  %v411_v19 = vand.u32 2147483647, %v400_v14  ;;  %v413_v21 = vand.u32 2147483648, %v400_v14  ;;  %v1280_v22 = vadd.f32 1.0, %v840_v15  ;;  %p972_p5 = por %p971_p4, %p970_p3 }
  0x67   : > { %v844_v18 = vpop.eup %843  ;;  %849 = vrcp.f32 %v401_v16  ;;  %v1282_v23 = vadd.f32 1.0, %v842_v17  ;;  %v426_v24 = vand.u32 2147483647, %v401_v16  ;;  %v428_v25 = vand.u32 2147483648, %v401_v16  ;;  %p968_p2 = pneg %p967_p13 }
  0x68   : > { %v846_v20 = vpop.eup %845  ;;  %v1284_v26 = vadd.f32 1.0, %v844_v18  ;;  %vm407_vm0 = vweird.f32 %v400_v14  ;;  %vm422_vm1 = vweird.f32 %v401_v16  ;;  %851 = vrcp.f32 %v1280_v22 }
  0x69   : > { %v371_v27 = vand.u32 2147483648, %v1280_v22  ;;  %vm1288_vm2 = vcmp.eq.f32.partialorder %v411_v19, 8.507059e+37  ;;  %v369_v29 = vand.u32 2147483647, %v1280_v22  ;;  %853 = vrcp.f32 %v1282_v23  ;;  %p973_p7 = pnand %p972_p5, %p968_p2 }
  0x6a   : > { %v1294_v30 = vadd.f32 1.0, %v846_v20  ;;  %v414_v32 = vor.u32 1.1754944e-38, %v413_v21  ;;  %v384_v33 = vand.u32 2147483647, %v1282_v23  ;;  %v386_v34 = vand.u32 2147483648, %v1282_v23 }
  0x6b   : > { %855 = vrcp.f32 %v1284_v26  ;;  %vm1299_vm3 = vcmp.eq.f32.partialorder %v426_v24, 8.507059e+37  ;;  %v429_v38 = vor.u32 1.1754944e-38, %v428_v25  ;;  %vm365_vm4 = vweird.f32 %v1280_v22 }
  0x6c   : > { %v848_v31 = vpop.eup %847  ;;  %v1304_v40 = vor.u32 1.1754944e-38, %v371_v27  ;;  %vm380_vm5 = vweird.f32 %v1282_v23  ;;  %v459_v41 = vand.u32 2147483648, %v1284_v26  ;;  %vm1308_vm7 = vcmp.eq.f32.partialorder %v369_v29, 8.507059e+37 }
  0x6d   : > { %v850_v35 = vpop.eup %849  ;;  %v403_v36 = vmul.f32 %v848_v31, %v400_v14  ;;  %vm408_vm6 = vweird.f32 %v848_v31  ;;  %vm453_vm8 = vweird.f32 %v1284_v26  ;;  %857 = vrcp.f32 %v1294_v30 }
  0x6e   : > { %v418_v39 = vmul.f32 %v850_v35, %v401_v16  ;;  %v852_v44 = vpop.eup %851  ;;  %vm423_vm9 = vweird.f32 %v850_v35  ;;  %vm1314_vm10 = vcmp.eq.f32.partialorder %v384_v33, 8.507059e+37  ;;  %v387_v47 = vor.u32 1.1754944e-38, %v386_v34  ;;  %vm1325_vm12 = vmor %vm407_vm0, %vm408_vm6 }
  0x6f   : > { %v404_v42 = vsub.f32 1.0, %v403_v36  ;;  %v854_v48 = vpop.eup %853  ;;  %v361_v50 = vmul.f32 %v852_v44, %v1280_v22  ;;  %v457_v51 = vand.u32 2147483647, %v1284_v26  ;;  %vm468_vm11 = vweird.f32 %v1294_v30  ;;  %vm1333_vm13 = vmor %vm422_vm1, %vm423_vm9 }
  0x70   : > { %v419_v45 = vsub.f32 1.0, %v418_v39  ;;  %v376_v55 = vmul.f32 %v854_v48, %v1282_v23  ;;  %v460_v56 = vor.u32 1.1754944e-38, %v459_v41  ;;  %v472_v57 = vand.u32 2147483647, %v1294_v30 }
  0x71   : > { %v405_v49 = vmul.f32 %v848_v31, %v404_v42  ;;  %v1321_v52 = vpop.eup %855  ;;  %v362_v60 = vsub.f32 1.0, %v361_v50  ;;  %vm366_vm14 = vweird.f32 %v852_v44  ;;  %vm381_vm15 = vweird.f32 %v854_v48 }
  0x72   : > { %v420_v54 = vmul.f32 %v850_v35, %v419_v45  ;;  %v449_v61 = vmul.f32 %v1321_v52, %v1284_v26  ;;  %v377_v63 = vsub.f32 1.0, %v376_v55  ;;  %v474_v0 = vand.u32 2147483648, %v1294_v30  ;;  %vm1361_vm1 = vmor %vm365_vm4, %vm366_vm14 }
  0x73   : > { %v406_v58 = vadd.f32 %v848_v31, %v405_v49  ;;  %v858_v1 = vpop.eup %857  ;;  %v363_v3 = vmul.f32 %v852_v44, %v362_v60  ;;  %vm454_vm0 = vweird.f32 %v1321_v52 }
  0x74   : > { %v421_v62 = vadd.f32 %v850_v35, %v420_v54  ;;  %v450_v4 = vsub.f32 1.0, %v449_v61  ;;  %v378_v8 = vmul.f32 %v854_v48, %v377_v63  ;;  %v464_v9 = vmul.f32 %v858_v1, %v1294_v30 }
  0x75   : > { %v410_v2 = vsel %vm1325_vm12, %v848_v31, %v406_v58  ;;  %v364_v12 = vadd.f32 %v852_v44, %v363_v3  ;;  %vm469_vm4 = vweird.f32 %v858_v1  ;;  %v475_v29 = vor.u32 1.1754944e-38, %v474_v0 }
  0x76   : > { %v415_v5 = vsel %vm1288_vm2, %v414_v32, %v410_v2  ;;  %v425_v6 = vsel %vm1333_vm13, %v850_v35, %v421_v62  ;;  %vm1375_vm2 = vmor %vm380_vm5, %vm381_vm15  ;;  %v451_v14 = vmul.f32 %v1321_v52, %v450_v4  ;;  %v379_v16 = vadd.f32 %v854_v48, %v378_v8 }
  0x77   : > { %v432_v10 = vmul.f32 -95.0, %v415_v5  ;;  %v430_v11 = vsel %vm1299_vm3, %v429_v38, %v425_v6  ;;  %vm1392_vm3 = vmor %vm453_vm8, %vm454_vm0  ;;  %v465_v18 = vsub.f32 1.0, %v464_v9  ;;  %v368_v20 = vsel %vm1361_vm1, %v852_v44, %v364_v12 }
  0x78   : > { %v433_v15 = vmul.f32 -95.0, %v430_v11  ;;  %v452_v21 = vadd.f32 %v1321_v52, %v451_v14  ;;  %vm458_vm5 = vcmp.eq.f32.partialorder %v457_v51, 8.507059e+37  ;;  %v373_v23 = vsel %vm1308_vm7, %v1304_v40, %v368_v20  ;;  %vm1416_vm6 = vmor %vm468_vm11, %vm469_vm4 }
  0x79   : > { %v434_v19 = vadd.f32 80.0, %v432_v10  ;;  %v383_v24 = vsel %vm1375_vm2, %v854_v48, %v379_v16  ;;  %v466_v25 = vmul.f32 %v858_v1, %v465_v18  ;;  %vm473_vm7 = vcmp.eq.f32.partialorder %v472_v57, 8.507059e+37  ;;  %390 = vst [vmem:[%s1350_s16] sm:$0xff] %v373_v23 }
  0x7a   : > { %v435_v22 = vadd.f32 80.0, %v433_v15  ;;  %v388_v26 = vsel %vm1314_vm10, %v387_v47, %v383_v24  ;;  %v456_v27 = vsel %vm1392_vm3, %v1321_v52, %v452_v21 }
  0x7b   : > { %436 = vst [vmem:[%s1346_s1] sm:$0xff] %v434_v19  ;;  %v461_v31 = vsel %vm458_vm5, %v460_v56, %v456_v27  ;;  %v467_v32 = vadd.f32 %v858_v1, %v466_v25 }
  0x7c   : > { %437 = vst [vmem:[%s1346_s1 + $0x8] sm:$0xff] %v435_v22  ;;  %v478_v33 = vmul.f32 -70.0, %v461_v31  ;;  %s1439_s1 = scalar_lea.sflag [#allocation10], %s282_s6 }
  0x7d   : > { %391 = vst [vmem:[%s1350_s16 + $0x8] sm:$0xff] %v388_v26  ;;  %v471_v30 = vsel %vm1416_vm6, %v858_v1, %v467_v32 }
  0x7e   : > { %v480_v34 = vadd.f32 60.0, %v478_v33  ;;  %v476_v35 = vsel %vm473_vm7, %v475_v29, %v471_v30 }
  0x7f   : > { %976 = shalt.err (!%p973_p7)
}
  0x80   : > { %s1083_s22 = smov 128   ;;  %s1084_s6 = smov 8   ;;  %v479_v36 = vmul.f32 -70.0, %v476_v35 }
  0x81   : > { %772 = dma.vmem_to_hbm [thread:$0]  (%p1163_p11), %s1384_s14, 256, %s527_s12, %s1439_s1, %s1083_s22, %s1083_s22, %s1084_s6  }
  0x82   : > { %s485_s27 = scalar_lea.sflag [#allocation4], %s1260_s0  ;;  %s991_s7 = sshra.s32 %s510_s13, 4  ;;  %s992_s7 = int_to_ptr.hbm [resolvable:$true] %s991_s7 }
  0x83   : > { %s993_s8 = scalar_lea.hbm %s992_s7, 16  ;;  %s997_s24 = scalar_lea.hbm %s1521_s3, 32 }
  0x84   : > { %p994_p0 = scmp.ne.s32.totalorder %s992_s7, %s993_s8  ;;  %p998_p1 = scmp.lt.s32.totalorder %s992_s7, %s1521_s3 }
  0x85   : > { %p999_p6 = scmp.lt.s32.totalorder %s997_s24, %s993_s8 }
  0x86   : > { %p995_p8 = pnand %p994_p0, %p1163_p11 }
  0x87   : > { %p1000_p13 = por %p999_p6, %p998_p1 }
  0x88   : > { %p996_p10 = pneg %p995_p8 }
  0x8a   : > { %p1001_p2 = pnand %p1000_p13, %p996_p10 }
  0x8c   : > { %1004 = shalt.err (!%p1001_p2)
}
  0x8d   : > { %771 = dma.vmem_to_hbm [thread:$0]  (%p1163_p11), %s1386_s23, 256, %s510_s13, %s485_s27, %s1083_s22, %s1083_s22, %s1084_s6   ;;  %v481_v37 = vadd.f32 60.0, %v479_v36 }
  0x8e   : > { %482 = vst [vmem:[%s1430_s17] sm:$0xff] %v480_v34  ;;  %s1019_s0 = sshra.s32 %s544_s28, 4  ;;  %s1025_s25 = scalar_lea.hbm %s1523_s5, 32  ;;  %s1020_s0 = int_to_ptr.hbm [resolvable:$true] %s1019_s0 }
  0x8f   : > { %483 = vst [vmem:[%s1430_s17 + $0x8] sm:$0xff] %v481_v37  ;;  %s1021_s14 = scalar_lea.hbm %s1020_s0, 16  ;;  %p1026_p7 = scmp.lt.s32.totalorder %s1020_s0, %s1523_s5 }
  0x90   : > { %p1022_p3 = scmp.ne.s32.totalorder %s1020_s0, %s1021_s14  ;;  %p1027_p0 = scmp.lt.s32.totalorder %s1025_s25, %s1021_s14 }
  0x92   : > { %p1023_p4 = pnand %p1022_p3, %p1163_p11  ;;  %p1028_p8 = por %p1027_p0, %p1026_p7 }
  0x94   : > { %p1024_p5 = pneg %p1023_p4 }
  0x96   : > { %p1029_p10 = pnand %p1028_p8, %p1024_p5 }
  0x98   : > { %1032 = shalt.err (!%p1029_p10)
}
  0x99   : > { %773 = dma.vmem_to_hbm [thread:$0]  (%p1163_p11), %s542_s11, 256, %s544_s28, %s1439_s1, %s1083_s22, %s1083_s22, %s1084_s6  }
  0x9a PF: > { %s558_s23 = sand.u32 1, %s1067_s18   ;;  %p788_p1 = pnand %p725_p9, %p1167_p12 }
  0x9b   : > { %s559_s13 = scalar_lea.sflag [#allocation4], %s558_s23 }
  0x9c   : > { %p789_p6 = pneg %p788_p1 }
  0x9e   : > { %1058 = dma.done.wait (%p789_p6), %s559_s13, 256  }
  0x9f   : > { %1060 = vsyncadd (%p789_p6), %s559_s13, 4294967040  ;;  %s1565_s17 = sadd.s32 4294967294, %s1079_s21  }
  0xa0   : > { %s568_s29 = sand.u32 1, %s1565_s17  }
  0xa1   : > { %s569_s27 = scalar_lea.sflag [#allocation10], %s568_s29 }
  0xa2   : > { %1062 = dma.done.wait (%p789_p6), %s569_s27, 512  }
  0xa3   : > { %1064 = vsyncadd (%p789_p6), %s569_s27, 4294966784  ;;  %s1566_s21 = sld [smem:[#allocation17_spill]]  ;;  %s1569_s18 = smov %s1071_s19 }
  0xa4   : > { %s1567_s11 = sld [smem:[#allocation16_spill]] }
  0xa5   : > { %s1568_s20 = sld [smem:[#allocation18_spill]] }
  0xa9   : > { %p25_p11 = scmp.ge.s32.totalorder %s1566_s21, 4  }
  0xaa   : > { %s1570_s19 = smov %s1567_s11 }
  0xab   :  { %27 = sbr.rel (!%p25_p11) target bundleno = 12 (0xc), region = 133 }
  0xb0   :  { %585 = vsyncpa [#allocation3], 1 }
  0xb1   :  { %587 = vsyncpa [#allocation3 + $0x1], 1 }
  0xb2   :  { %588 = vsyncpa [#allocation6], 1 }
  0xb3   :  { %590 = vsyncpa [#allocation6 + $0x1], 1 }
  0xb4   :  { %591 = vsyncpa [#allocation4], 1 }
  0xb5   :  { %593 = vsyncpa [#allocation4 + $0x1], 1 }
  0xb6   :  { %594 = vsyncpa [#allocation10], 1 }
  0xb7   :  { %596 = vsyncpa [#allocation10 + $0x1], 1 }

</bundles_post_ra>
